<compile_context>
chip_gen: v7x
topology: tpu7x:2x2x1
jax: 0.10.0
libtpu: 0.0.40
codegen_flags: <defaults>
</compile_context>

<pallas_src>
import functools

import jax
import jax.numpy as jnp
from jax.experimental import pallas as pl
from jax.experimental.pallas import tpu as pltpu


def _round_up(x, m):
    return ((x + m - 1) // m) * m


def _dueling_head_kernel(n_actions, n_atoms,
                         h_ref, w_ref, b_ref, bmat_ref, smat_ref, out_ref):
    """Fused matmul + segmented (per-action) softmax at full lane width.

    h_ref   : (block_b, in_size)   bf16  activations
    w_ref   : (in_size, AN_pad)    bf16  folded dueling weights (zero-padded lanes)
    b_ref   : (1, AN_pad)          f32   folded bias
    bmat_ref: (A, AN_pad)          f32   0/1 rows broadcasting a segment scalar
    smat_ref: (AN_pad, AN_pad)     f32   0/1 block-diagonal segment-sum matrix
    out_ref : (block_b, AN_pad)    f32   per-action softmax probabilities
    """
    A, N = n_actions, n_atoms

    # Single MXU pass: the dueling combine is already folded into the weights.
    logits = jnp.dot(h_ref[...], w_ref[...],
                     preferred_element_type=jnp.float32) + b_ref[...]

    # Per-action max (safe stabilizer even if action logit scales diverge),
    # broadcast back to full lane width via the 0/1 rows of bmat.
    bm = bmat_ref[...]
    m_b = jnp.max(logits[:, 0:N], axis=-1, keepdims=True) * bm[0:1, :]
    for a in range(1, A):
        m_a = jnp.max(logits[:, a * N:(a + 1) * N], axis=-1, keepdims=True)
        m_b = m_b + m_a * bm[a:a + 1, :]

    # Full-width exp, MXU segment sums, exact divide, ONE wide unmasked store.
    e = jnp.exp(logits - m_b)
    denom = jnp.dot(e, smat_ref[...], preferred_element_type=jnp.float32)
    out_ref[...] = e / denom


def pack_dueling_params(wa_t, ba, wv_t, bv, *, n_actions, n_atoms,
                        compute_dtype=jnp.bfloat16):
    """Fold the dueling combine into a single weight/bias (call once per update).

    q[b, a, n] = a_logits[b,a,n] - mean_a'(a_logits[b,a',n]) + v_logits[b,n]
    is linear in h, so it equals h @ W_q + b_q with
        W_q[:half, a*N+n] = Wa_t[:, a*N+n] - mean_a'(Wa_t[:, a'*N+n])
        W_q[half:, a*N+n] = Wv_t[:, n]
        b_q[a*N+n]        = ba[a*N+n] - mean_a'(ba[a'*N+n]) + bv[n]
    The output lane dim is zero-padded to a multiple of 128 so the kernel's
    store is lane-dense/unmasked; bmat/smat are the constant 0/1 matrices used
    for the per-segment max broadcast and the MXU segment sums.
    """
    A, N = n_actions, n_atoms
    AN = A * N
    half = wa_t.shape[0]
    an_pad = _round_up(AN, 128)

    wa = wa_t.astype(jnp.float32).reshape(half, A, N)
    wa_c = (wa - wa.mean(axis=1, keepdims=True)).reshape(half, AN)
    wv_rep = jnp.tile(wv_t.astype(jnp.float32), (1, A))          # col a*N+n -> Wv[:, n]
    w_q = jnp.concatenate([wa_c, wv_rep], axis=0)                # (in_size, AN)

    ba_f = ba.astype(jnp.float32).reshape(A, N)
    b_q = (ba_f - ba_f.mean(axis=0, keepdims=True)).reshape(AN) \
        + jnp.tile(bv.astype(jnp.float32), A)

    w_q = jnp.pad(w_q, ((0, 0), (0, an_pad - AN))).astype(compute_dtype)
    b_q = jnp.pad(b_q, (0, an_pad - AN)).reshape(1, an_pad).astype(jnp.float32)

    col = jnp.arange(an_pad)
    seg = col // N                        # padded lanes get seg >= A (never matched)
    bmat = (seg[None, :] == jnp.arange(A)[:, None]).astype(jnp.float32)   # (A, an_pad)
    # Segment-sum matrix; padded lanes form their own blocks of ones so their
    # denominator is >= 1 (never 0/0); those lanes are sliced off in the wrapper.
    smat = (seg[:, None] == seg[None, :]).astype(jnp.float32)             # (an_pad, an_pad)
    return w_q, b_q, bmat, smat


def _pick_block_b(batch, per_row_bytes, fixed_bytes):
    """Size the batch block from the VMEM budget instead of a flat constant."""
    budget = 26 * 1024 * 1024 - fixed_bytes          # stay under the 32 MiB limit below
    block_b = max(16, (budget // per_row_bytes) // 16 * 16)
    block_b = min(block_b, 2048)
    if batch >= 256:
        # Keep >=2 grid steps so v7x (2 TensorCores/chip) can shard the batch axis.
        block_b = min(block_b, _round_up(pl.cdiv(batch, 2), 16))
    if block_b >= batch:
        # Single grid step: the block covers the (8-padded) full batch.
        block_b = _round_up(batch, 8)
    return block_b


def distributional_dueling_head(h, packed, *, n_actions, n_atoms):
    """Forward pass.  Returns probs of shape (B, n_actions, n_atoms)."""
    w_q, b_q, bmat, smat = packed
    B, in_size = h.shape
    assert in_size % 2 == 0
    A, N = n_actions, n_atoms
    AN = A * N
    an_pad = w_q.shape[1]
    compute_dtype = w_q.dtype
    itemsize = jnp.dtype(compute_dtype).itemsize

    # VMEM accounting: double-buffered activation + output blocks, ~4 in-kernel
    # f32 temporaries per row, plus the resident packed weights / S matrix.
    per_row = 2 * in_size * itemsize + 2 * an_pad * 4 + 4 * an_pad * 4
    fixed = (in_size * an_pad * itemsize + an_pad * an_pad * 4
             + (A + 2) * an_pad * 4)
    block_b = _pick_block_b(B, per_row, fixed)
    b_pad = _round_up(B, block_b)

    h_in = h.astype(compute_dtype)
    if b_pad != B:
        h_in = jnp.pad(h_in, ((0, b_pad - B), (0, 0)))

    kernel = functools.partial(_dueling_head_kernel, A, N)
    out_flat = pl.pallas_call(
        kernel,
        out_shape=jax.ShapeDtypeStruct((b_pad, an_pad), jnp.float32),
        grid=(b_pad // block_b,),
        in_specs=[
            pl.BlockSpec((block_b, in_size), lambda i: (i, 0)),   # activations: pipelined
            pl.BlockSpec((in_size, an_pad), lambda i: (0, 0)),    # folded weights: VMEM-resident
            pl.BlockSpec((1, an_pad), lambda i: (0, 0)),          # folded bias
            pl.BlockSpec((A, an_pad), lambda i: (0, 0)),          # segment broadcast rows
            pl.BlockSpec((an_pad, an_pad), lambda i: (0, 0)),     # segment-sum matrix
        ],
        out_specs=pl.BlockSpec((block_b, an_pad), lambda i: (i, 0)),  # lane-dense wide store
        compiler_params=pltpu.CompilerParams(
            dimension_semantics=("parallel",),
            vmem_limit_bytes=32 * 1024 * 1024),
    )(h_in, w_q, b_q, bmat, smat)

    return out_flat[:B, :AN].reshape(B, A, N)


def _reference(h, wa_t, ba, wv_t, bv, n_actions, n_atoms):
    """Plain-JAX reference mirroring the PyTorch forward."""
    half = h.shape[1] // 2
    h_a, h_v = h[:, :half], h[:, half:]
    a_logits = (h_a @ wa_t + ba).reshape(-1, n_actions, n_atoms)
    a_logits = a_logits - a_logits.mean(axis=1, keepdims=True)
    v_logits = (h_v @ wv_t + bv).reshape(-1, 1, n_atoms)
    return jax.nn.softmax(a_logits + v_logits, axis=2)


if __name__ == "__main__":
    # Small shapes consistent with the module's forward.
    B = 8
    in_size = 32          # must be even
    n_actions = 4
    n_atoms = 16
    v_min, v_max = -10.0, 10.0
    half = in_size // 2

    key = jax.random.PRNGKey(0)
    k_h, k_wa, k_ba, k_wv, k_bv = jax.random.split(key, 5)

    # torch Linear weight is (out, in); the wrapper takes the transposed (in, out) form.
    h = jax.random.normal(k_h, (B, in_size), dtype=jnp.float32)
    wa_t = jax.random.normal(k_wa, (half, n_actions * n_atoms), jnp.float32) * 0.1
    ba = jax.random.normal(k_ba, (n_actions * n_atoms,), jnp.float32) * 0.1
    wv_t = jax.random.normal(k_wv, (half, n_atoms), jnp.float32) * 0.1
    bv = jax.random.normal(k_bv, (n_atoms,), jnp.float32) * 0.1

    # z_values buffer (atom support) — pure glue, no kernel needed.
    z_values = jnp.linspace(v_min, v_max, n_atoms, dtype=jnp.float32)

    # Parameter packing is hoisted out of the per-step forward (review item):
    # it runs once per parameter update, not per environment step.
    packed = pack_dueling_params(wa_t, ba, wv_t, bv,
                                 n_actions=n_actions, n_atoms=n_atoms)

    probs = distributional_dueling_head(
        h, packed, n_actions=n_actions, n_atoms=n_atoms)
    probs = jax.block_until_ready(probs)

    ref = _reference(h, wa_t, ba, wv_t, bv, n_actions, n_atoms)
    assert probs.shape == (B, n_actions, n_atoms)
    # bf16 matmul inputs (f32 accumulate, f32 softmax) -> ~1e-3-level logit
    # rounding vs the f32 reference.
    assert jnp.allclose(probs, ref, atol=1e-2, rtol=1e-2), \
        float(jnp.max(jnp.abs(probs - ref)))
    # Exact division + f32 segment sums: rows are normalized to f32 accuracy.
    assert jnp.allclose(probs.sum(axis=-1), 1.0, atol=1e-3)
    # TODO(synk): DistributionalDiscreteActionValue is a pfrl container class;
    # we return (probs, z_values) instead of wrapping in that object.
    _ = z_values

    print("KERNEL_OK")
</pallas_src>

<mosaic_0001>
module attributes {stable_mosaic.version = 11 : i64} {
  func.func @_dueling_head_kernel(%arg0: i32, %arg1: memref<8x32xbf16, #tpu.memory_space<vmem>>, %arg2: memref<32x128xbf16, #tpu.memory_space<vmem>>, %arg3: memref<1x128xf32, #tpu.memory_space<vmem>>, %arg4: memref<4x128xf32, #tpu.memory_space<vmem>>, %arg5: memref<128x128xf32, #tpu.memory_space<vmem>>, %arg6: memref<8x128xf32, #tpu.memory_space<vmem>>) attributes {dimension_semantics = [#tpu.dimension_semantics<parallel>], iteration_bounds = array<i64: 1>, scalar_prefetch = 0 : i64, scratch_operands = 0 : i64, tpu.core_type = #tpu.core_type<tc>, window_params = [{transform_indices = @transform_0, window_bounds = array<i64: 8, 32>}, {pipeline_mode = #tpu.pipeline_mode<synchronous>, transform_indices = @transform_1, window_bounds = array<i64: 32, 128>}, {pipeline_mode = #tpu.pipeline_mode<synchronous>, transform_indices = @transform_2, window_bounds = array<i64: 1, 128>}, {pipeline_mode = #tpu.pipeline_mode<synchronous>, transform_indices = @transform_3, window_bounds = array<i64: 4, 128>}, {pipeline_mode = #tpu.pipeline_mode<synchronous>, transform_indices = @transform_4, window_bounds = array<i64: 128, 128>}, {transform_indices = @transform_5, window_bounds = array<i64: 8, 128>}]} {
    %c0 = arith.constant 0 : index
    %c0_0 = arith.constant 0 : index
    %0 = vector.load %arg1[%c0, %c0_0] : memref<8x32xbf16, #tpu.memory_space<vmem>>, vector<8x32xbf16>
    %c0_1 = arith.constant 0 : index
    %c0_2 = arith.constant 0 : index
    %1 = vector.load %arg2[%c0_1, %c0_2] : memref<32x128xbf16, #tpu.memory_space<vmem>>, vector<32x128xbf16>
    %cst = arith.constant dense<0.000000e+00> : vector<8x128xf32>
    %2 = tpu.matmul %0, %1, %cst {dimension_numbers = #tpu.dot_dimension_numbers<[1], [0], [0], [1], [0, 0, 1, 1], [], []>} : vector<8x32xbf16>, vector<32x128xbf16>, vector<8x128xf32> -> vector<8x128xf32>
    %c0_3 = arith.constant 0 : index
    %c0_4 = arith.constant 0 : index
    %3 = vector.load %arg3[%c0_3, %c0_4] : memref<1x128xf32, #tpu.memory_space<vmem>>, vector<1x128xf32>
    %4 = vector.broadcast %3 : vector<1x128xf32> to vector<8x128xf32>
    %5 = arith.addf %2, %4 : vector<8x128xf32>
    %c0_5 = arith.constant 0 : index
    %c0_6 = arith.constant 0 : index
    %6 = vector.load %arg4[%c0_5, %c0_6] : memref<4x128xf32, #tpu.memory_space<vmem>>, vector<4x128xf32>
    %7 = vector.extract_strided_slice %5 {offsets = [0, 0], sizes = [8, 16], strides = [1, 1]} : vector<8x128xf32> to vector<8x16xf32>
    %cst_7 = arith.constant dense<0xFF800000> : vector<8xf32>
    %8 = vector.multi_reduction <maximumf>, %7, %cst_7 [1] : vector<8x16xf32> to vector<8xf32>
    %9 = vector.shape_cast %8 : vector<8xf32> to vector<8x1xf32>
    %10 = vector.extract_strided_slice %6 {offsets = [0, 0], sizes = [1, 128], strides = [1, 1]} : vector<4x128xf32> to vector<1x128xf32>
    %11 = vector.broadcast %9 : vector<8x1xf32> to vector<8x128xf32>
    %12 = vector.broadcast %10 : vector<1x128xf32> to vector<8x128xf32>
    %13 = arith.mulf %11, %12 : vector<8x128xf32>
    %14 = vector.extract_strided_slice %5 {offsets = [0, 16], sizes = [8, 16], strides = [1, 1]} : vector<8x128xf32> to vector<8x16xf32>
    %cst_8 = arith.constant dense<0xFF800000> : vector<8xf32>
    %15 = vector.multi_reduction <maximumf>, %14, %cst_8 [1] : vector<8x16xf32> to vector<8xf32>
    %16 = vector.shape_cast %15 : vector<8xf32> to vector<8x1xf32>
    %17 = vector.extract_strided_slice %6 {offsets = [1, 0], sizes = [1, 128], strides = [1, 1]} : vector<4x128xf32> to vector<1x128xf32>
    %18 = vector.broadcast %16 : vector<8x1xf32> to vector<8x128xf32>
    %19 = vector.broadcast %17 : vector<1x128xf32> to vector<8x128xf32>
    %20 = arith.mulf %18, %19 : vector<8x128xf32>
    %21 = arith.addf %13, %20 : vector<8x128xf32>
    %22 = vector.extract_strided_slice %5 {offsets = [0, 32], sizes = [8, 16], strides = [1, 1]} : vector<8x128xf32> to vector<8x16xf32>
    %cst_9 = arith.constant dense<0xFF800000> : vector<8xf32>
    %23 = vector.multi_reduction <maximumf>, %22, %cst_9 [1] : vector<8x16xf32> to vector<8xf32>
    %24 = vector.shape_cast %23 : vector<8xf32> to vector<8x1xf32>
    %25 = vector.extract_strided_slice %6 {offsets = [2, 0], sizes = [1, 128], strides = [1, 1]} : vector<4x128xf32> to vector<1x128xf32>
    %26 = vector.broadcast %24 : vector<8x1xf32> to vector<8x128xf32>
    %27 = vector.broadcast %25 : vector<1x128xf32> to vector<8x128xf32>
    %28 = arith.mulf %26, %27 : vector<8x128xf32>
    %29 = arith.addf %21, %28 : vector<8x128xf32>
    %30 = vector.extract_strided_slice %5 {offsets = [0, 48], sizes = [8, 16], strides = [1, 1]} : vector<8x128xf32> to vector<8x16xf32>
    %cst_10 = arith.constant dense<0xFF800000> : vector<8xf32>
    %31 = vector.multi_reduction <maximumf>, %30, %cst_10 [1] : vector<8x16xf32> to vector<8xf32>
    %32 = vector.shape_cast %31 : vector<8xf32> to vector<8x1xf32>
    %33 = vector.extract_strided_slice %6 {offsets = [3, 0], sizes = [1, 128], strides = [1, 1]} : vector<4x128xf32> to vector<1x128xf32>
    %34 = vector.broadcast %32 : vector<8x1xf32> to vector<8x128xf32>
    %35 = vector.broadcast %33 : vector<1x128xf32> to vector<8x128xf32>
    %36 = arith.mulf %34, %35 : vector<8x128xf32>
    %37 = arith.addf %29, %36 : vector<8x128xf32>
    %38 = arith.subf %5, %37 : vector<8x128xf32>
    %39 = math.exp %38 : vector<8x128xf32>
    %c0_11 = arith.constant 0 : index
    %c0_12 = arith.constant 0 : index
    %40 = vector.load %arg5[%c0_11, %c0_12] : memref<128x128xf32, #tpu.memory_space<vmem>>, vector<128x128xf32>
    %cst_13 = arith.constant dense<0.000000e+00> : vector<8x128xf32>
    %41 = tpu.matmul %39, %40, %cst_13 {dimension_numbers = #tpu.dot_dimension_numbers<[1], [0], [0], [1], [0, 0, 1, 1], [], []>} : vector<8x128xf32>, vector<128x128xf32>, vector<8x128xf32> -> vector<8x128xf32>
    %42 = arith.divf %39, %41 : vector<8x128xf32>
    %c0_14 = arith.constant 0 : index
    %c0_15 = arith.constant 0 : index
    %43 = vector.load %arg6[%c0_14, %c0_15] : memref<8x128xf32, #tpu.memory_space<vmem>>, vector<8x128xf32>
    tpu.vector_store %arg6[%c0_14, %c0_15], %42 {strides = array<i32>} : memref<8x128xf32, #tpu.memory_space<vmem>>, vector<8x128xf32>,
    return
  }
  func.func @transform_0(%arg0: i32) -> (i32, i32) {
    %c0_i32 = arith.constant 0 : i32
    %c0_i32_0 = arith.constant 0 : i32
    return %arg0, %c0_i32 : i32, i32
  }
  func.func @transform_1(%arg0: i32) -> (i32, i32) {
    %c0_i32 = arith.constant 0 : i32
    %c0_i32_0 = arith.constant 0 : i32
    %c0_i32_1 = arith.constant 0 : i32
    return %c0_i32, %c0_i32_0 : i32, i32
  }
  func.func @transform_2(%arg0: i32) -> (i32, i32) {
    %c0_i32 = arith.constant 0 : i32
    %c0_i32_0 = arith.constant 0 : i32
    %c0_i32_1 = arith.constant 0 : i32
    return %c0_i32, %c0_i32_0 : i32, i32
  }
  func.func @transform_3(%arg0: i32) -> (i32, i32) {
    %c0_i32 = arith.constant 0 : i32
    %c0_i32_0 = arith.constant 0 : i32
    %c0_i32_1 = arith.constant 0 : i32
    return %c0_i32, %c0_i32_0 : i32, i32
  }
  func.func @transform_4(%arg0: i32) -> (i32, i32) {
    %c0_i32 = arith.constant 0 : i32
    %c0_i32_0 = arith.constant 0 : i32
    %c0_i32_1 = arith.constant 0 : i32
    return %c0_i32, %c0_i32_0 : i32, i32
  }
  func.func @transform_5(%arg0: i32) -> (i32, i32) {
    %c0_i32 = arith.constant 0 : i32
    %c0_i32_0 = arith.constant 0 : i32
    return %arg0, %c0_i32 : i32, i32
  }
}

</mosaic_0001>

<bundles_post_ra>
// kernel: tpu_custom_call.1
= control target key start
LH: loop header
LB: loop body
LE: loop exit
PB: predicated region body
PF: predicated region fallthrough
CT: control target
= control target key end

     0   :  { %10 = vsyncpa [#allocation3], 0  ;;  %s581_s0 = inlined_call_operand.hbm [shape: bf16[8,32], index: 0, kind: input, shape index: {}]   ;;  %s582_s1 = inlined_call_operand.hbm [shape: bf16[32,128], index: 1, kind: input, shape index: {}]   ;;  %s583_s2 = inlined_call_operand.vmem [shape: f32[1,128], index: 2, kind: input, shape index: {}]   ;;  %s584_s3 = inlined_call_operand.vmem [shape: f32[4,128], index: 3, kind: input, shape index: {}]   ;;  %s585_s4 = inlined_call_operand.hbm [shape: f32[128,128], index: 4, kind: input, shape index: {}]   ;;  %s586_s5 = inlined_call_operand.hbm [shape: f32[8,128], index: 5, kind: output, shape index: {}]  }
   0x1   :  { %11 = vsyncpa [#allocation6], 0 }
   0x2   :  { %12 = vsyncpa [#allocation4], 0  ;;  %s479_s18 = smov [#allocation5]   ;;  %s385_s22 = scalar_lea.hbm %s582_s1, 256 }
   0x3   :  { %s28_s19 = sshll.u32 %s479_s18, 4  ;;  %p386_p0 = scmp.ne.s32.totalorder %s582_s1, %s385_s22  ;;  %s29_s19 = int_to_ptr.vmem [resolvable:$true] %s28_s19 }
   0x4   :  { %p389_p1 = scmp.lt.u32.totalorder %s385_s22, %s582_s1 }
   0x6   :  { %p391_p2 = pnand %p389_p1, %p386_p0 }
   0x8   :  { %394 = shalt.err (!%p391_p2)
}
   0x9   :  { %s395_s27 = scalar_lea.vmem %s29_s19, 256  ;;  %p400_p4 = scmp.lt.s32.totalorder %s29_s19, %s29_s19 }
   0xa   :  { %p396_p3 = scmp.ne.s32.totalorder %s29_s19, %s395_s27  ;;  %p401_p5 = scmp.lt.s32.totalorder %s395_s27, %s395_s27 }
   0xc   :  { %p402_p6 = por %p401_p5, %p400_p4 }
   0xe   :  { %p403_p7 = pnand %p402_p6, %p396_p3 }
  0x10   :  { %406 = shalt.err (!%p403_p7)
}
  0x11   :  { %s480_s28 = smov 64   ;;  %s481_s29 = smov 4  }
  0x12   :  { %34 = dma.hbm_to_vmem [thread:$0]  %s582_s1, 256, %s29_s19, [#allocation6], %s480_s28, %s480_s28, %s481_s29  }
  0x13   :  { %s482_s7 = smov [#allocation2]   ;;  %s483_s9 = smov [#allocation7]  }
  0x14   :  { %s19_s8 = sshll.u32 %s482_s7, 4  ;;  %s44_s10 = sshll.u32 %s483_s9, 4  ;;  %s20_s8 = int_to_ptr.vmem [resolvable:$true] %s19_s8  ;;  %s45_s10 = int_to_ptr.vmem [resolvable:$true] %s44_s10 }
  0x15   :  { %s407_s13 = scalar_lea.hbm %s581_s0, 64 }
  0x16   :  { %p408_p8 = scmp.ne.s32.totalorder %s581_s0, %s407_s13  ;;  %p411_p9 = scmp.lt.u32.totalorder %s407_s13, %s581_s0 }
  0x18   :  { %p413_p10 = pnand %p411_p9, %p408_p8 }
  0x1a   :  { %416 = shalt.err (!%p413_p10)
}
  0x1b   :  { %s417_s1 = scalar_lea.vmem %s20_s8, 64  ;;  %p422_p12 = scmp.lt.s32.totalorder %s20_s8, %s20_s8 }
  0x1c   :  { %p418_p11 = scmp.ne.s32.totalorder %s20_s8, %s417_s1  ;;  %p423_p13 = scmp.lt.s32.totalorder %s417_s1, %s417_s1 }
  0x1e   :  { %p424_p0 = por %p423_p13, %p422_p12 }
  0x20   :  { %p425_p1 = pnand %p424_p0, %p418_p11 }
  0x22   :  { %428 = shalt.err (!%p425_p1)
}
  0x23   :  { %22 = dma.hbm_to_vmem [thread:$0]  %s581_s0, 64, %s20_s8, [#allocation3]  }
  0x24   :  { %s429_s22 = scalar_lea.hbm %s585_s4, 2048 }
  0x25   :  { %p430_p2 = scmp.ne.s32.totalorder %s585_s4, %s429_s22  ;;  %p433_p3 = scmp.lt.u32.totalorder %s429_s22, %s585_s4 }
  0x27   :  { %p435_p4 = pnand %p433_p3, %p430_p2 }
  0x29   :  { %438 = shalt.err (!%p435_p4)
}
  0x2a   :  { %s439_s27 = scalar_lea.vmem %s45_s10, 2048  ;;  %p444_p6 = scmp.lt.s32.totalorder %s45_s10, %s45_s10 }
  0x2b   :  { %p440_p5 = scmp.ne.s32.totalorder %s45_s10, %s439_s27  ;;  %p445_p7 = scmp.lt.s32.totalorder %s439_s27, %s439_s27 }
  0x2d   :  { %p446_p8 = por %p445_p7, %p444_p6 }
  0x2f   :  { %p447_p9 = pnand %p446_p8, %p440_p5 }
  0x31   :  { %450 = shalt.err (!%p447_p9)
}
  0x32   :  { %s484_s0 = smov 128   ;;  %s485_s28 = smov 8  }
  0x33   :  { %50 = dma.hbm_to_vmem [thread:$0]  %s585_s4, 2048, %s45_s10, [#allocation6], %s484_s0, %s484_s0, %s485_s28  }
  0x34   :  { %473 = dma.done.wait [#allocation3], 64  }
  0x35   :  { %474 = vsyncadd [#allocation3], 4294967232 }
  0x36   :  { %475 = dma.done.wait [#allocation6], 2304  }
  0x37   :  { %476 = vsyncadd [#allocation6], 4294964992  ;;  %v486_v0 = vmov 0.0   ;;  %vm487_vm0 = vmmov 0   ;;  %v379_v1 = vld [vmem:[#allocation5] sm:$0xff]   ;;  %v380_v2 = vld [vmem:[#allocation5 + $0x8] sm:$0xff]   ;;  %v134_v39 = vlaneseq }
  0x38   :  { %301 = vmatprep.subr.bf16.mxu0 %v486_v0  ;;  %305 = vmatprep.mubr.msk.bf16.mxu0 %vm487_vm0, %v486_v0  ;;  %v61_v3 = vld [vmem:[#allocation2] sm:$0xf]  ;;  %vm85_vm1 = vcmask 261120   ;;  %v172_v4 = vld [vmem:[#allocation7] sm:$0xff]  ;;  %v488_v6 = vmov 0.0|0.0   ;;  %vm149_vm2 = vcmask 392448  }
  0x39   :  { %341 = vmatprep.mubr.msk.f32.mxu1 %vm487_vm0, %v486_v0  ;;  %302 = vmatpush3.bf16.msra.mxu0 %v379_v1  ;;  %v173_v5 = vld [vmem:[#allocation7 + $0x8] sm:$0xff]  ;;  %vm130_vm3 = vcmask 130048   ;;  %vm159_vm4 = vcmask 523648   ;;  %vm139_vm5 = vcmask 261248   ;;  %v174_v18 = vld [vmem:[#allocation7 + $0x10] sm:$0xff]  ;;  %v175_v19 = vld [vmem:[#allocation7 + $0x18] sm:$0xff] }
  0x3a   :  { %303 = vmatprep.subr.bf16.mxu0 %v486_v0  ;;  %344 = vmatprep.subr.bf16.mxu1 %v488_v6  ;;  %v345_v7 = vpack.c.bf16 %v173_v5, %v172_v4  ;;  %v277_v8 = vld [vmem:[%s583_s2] ss:$0 sm:$0xff]  ;;  %v348_v20 = vpack.c.bf16 %v175_v19, %v174_v18  ;;  %v176_v21 = vld [vmem:[#allocation7 + $0x20] sm:$0xff]  ;;  %v178_v24 = vld [vmem:[#allocation7 + $0x30] sm:$0xff]  ;;  %v135_v40 = vshrl.u32 %v134_v39, 7 }
  0x3b   :  { %v177_v22 = vld [vmem:[#allocation7 + $0x28] sm:$0xff]  ;;  %v179_v25 = vld [vmem:[#allocation7 + $0x38] sm:$0xff]  ;;  %v180_v27 = vld [vmem:[#allocation7 + $0x40] sm:$0xff] }
  0x3c   :  { %346 = vmatpush3.bf16.msra.mxu1 %v345_v7  ;;  %v351_v23 = vpack.c.bf16 %v177_v22, %v176_v21  ;;  %v354_v26 = vpack.c.bf16 %v179_v25, %v178_v24  ;;  %v181_v28 = vld [vmem:[#allocation7 + $0x48] sm:$0xff]  ;;  %v182_v30 = vld [vmem:[#allocation7 + $0x50] sm:$0xff]  ;;  %v183_v31 = vld [vmem:[#allocation7 + $0x58] sm:$0xff]  ;;  %v136_v41 = vsub.s32 0, %v135_v40  ;;  %v145_v42 = vsub.s32 1, %v135_v40 }
  0x3d   :  { %304 = vmatpush3.bf16.msra.mxu0 %v380_v2  ;;  %347 = vmatprep.subr.bf16.mxu1 %v488_v6  ;;  %v357_v29 = vpack.c.bf16 %v181_v28, %v180_v27  ;;  %v360_v32 = vpack.c.bf16 %v183_v31, %v182_v30  ;;  %v184_v33 = vld [vmem:[#allocation7 + $0x60] sm:$0xff]  ;;  %v185_v34 = vld [vmem:[#allocation7 + $0x68] sm:$0xff]  ;;  %v186_v36 = vld [vmem:[#allocation7 + $0x70] sm:$0xff]  ;;  %v155_v44 = vsub.s32 2, %v135_v40  ;;  %v165_v48 = vsub.s32 3, %v135_v40 }
  0x3e   :  { %v363_v35 = vpack.c.bf16 %v185_v34, %v184_v33  ;;  %v187_v37 = vld [vmem:[#allocation7 + $0x78] sm:$0xff]  ;;  %v129_v43 = vld [vmem:[%s584_s3] sm:$0xf]  ;;  %s489_s3 = smov [#allocation8]  }
  0x3f   :  { %v366_v38 = vpack.c.bf16 %v187_v37, %v186_v36  ;;  %v137_v47 = vrot.slane %v129_v43, %v136_v41  ;;  %v146_v49 = vrot.slane %v129_v43, %v145_v42  ;;  %v156_v50 = vrot.slane %v129_v43, %v155_v44  ;;  %s267_s8 = sshll.u32 %s489_s3, 4  ;;  %s268_s8 = int_to_ptr.vmem [resolvable:$true] %s267_s8 }
  0x40   :  { %306 = vmatmul.mubr.msk.bf16.vlgmr.msra.gmra.mrb[0].mxu0 %vm85_vm1, %v61_v3  ;;  %349 = vmatpush3.bf16.msra.mxu1 %v348_v20  ;;  %v166_v53 = vrot.slane %v129_v43, %v165_v48  ;;  %s451_s9 = scalar_lea.vmem %s268_s8, 128  ;;  %p456_p11 = scmp.lt.s32.totalorder %s268_s8, %s268_s8 }
  0x41   :  { %350 = vmatprep.subr.bf16.mxu1 %v488_v6  ;;  %p452_p10 = scmp.ne.s32.totalorder %s268_s8, %s451_s9  ;;  %p457_p12 = scmp.lt.s32.totalorder %s451_s9, %s451_s9 }
  0x43   :  { %p458_p13 = por %p457_p12, %p456_p11 }
  0x44   :  { %352 = vmatpush3.bf16.msra.mxu1 %v351_v23 }
  0x45   :  { %353 = vmatprep.subr.bf16.mxu1 %v488_v6  ;;  %p459_p0 = pnand %p458_p13, %p452_p10 }
  0x48   :  { %355 = vmatpush3.bf16.msra.mxu1 %v354_v26 }
  0x49   :  { %356 = vmatprep.subr.bf16.mxu1 %v488_v6 }
  0x4c   :  { %358 = vmatpush3.bf16.msra.mxu1 %v357_v29 }
  0x4d   :  { %359 = vmatprep.subr.bf16.mxu1 %v488_v6 }
  0x50   :  { %361 = vmatpush3.bf16.msra.mxu1 %v360_v32 }
  0x51   :  { %362 = vmatprep.subr.bf16.mxu1 %v488_v6 }
  0x54   :  { %364 = vmatpush3.bf16.msra.mxu1 %v363_v35 }
  0x55   :  { %365 = vmatprep.subr.bf16.mxu1 %v488_v6 }
  0x58   :  { %367 = vmatpush3.bf16.msra.mxu1 %v366_v38 }
 0x113   :  { %v123_v9 = vpop.f32.mrb[0].mxu0 }
 0x114   :  { %v559_v10 = vadd.f32 %v277_v8, %v123_v9  ;;  %v307_v11 = vpop.f32.mrb[1].mxu0 }
 0x115   :  { %v126_v12 = vpop.f32.mrb[2].mxu0 }
 0x116   :  { %v308_v13 = vpop.f32.mrb[3].mxu0  ;;  %v150_v14 = vsel %vm149_vm2, %v559_v10, -inf  ;;  %v131_v15 = vsel %vm130_vm3, %v559_v10, -inf  ;;  %v160_v16 = vsel %vm159_vm4, %v559_v10, -inf  ;;  %v140_v17 = vsel %vm139_vm5, %v559_v10, -inf }
 0x117   :  { %151 = vmax.xlane.f32.xlu1 %v150_v14  ;;  %132 = vmax.xlane.f32.xlu0 %v131_v15 }
 0x11b   :  { %161 = vmax.xlane.f32.xlu1 %v160_v16  ;;  %141 = vmax.xlane.f32.xlu0 %v140_v17 }
 0x1a4   :  { %v152_v45 = vpop.xlane.xlu1 %151  ;;  %v133_v46 = vpop.xlane.xlu0 %132 }
 0x1a5   :  { %v138_v52 = vmul.f32 %v137_v47, %v133_v46  ;;  %v157_v56 = vmul.f32 %v156_v50, %v152_v45 }
 0x1a8   :  { %v142_v51 = vpop.xlane.xlu0 %141  ;;  %v162_v55 = vpop.xlane.xlu1 %161 }
 0x1a9   :  { %v147_v54 = vmul.f32 %v146_v49, %v142_v51  ;;  %v167_v58 = vmul.f32 %v166_v53, %v162_v55 }
 0x1ab   :  { %v148_v57 = vadd.f32 %v147_v54, %v138_v52 }
 0x1ad   :  { %v158_v59 = vadd.f32 %v157_v56, %v148_v57 }
 0x1af   :  { %v168_v60 = vadd.f32 %v167_v58, %v158_v59 }
 0x1b1   :  { %v169_v61 = vsub.f32 %v559_v10, %v168_v60 }
 0x1b3   :  { %v170_v62 = vmul.f32 1.442695, %v169_v61 }
 0x1b5   :  { %381 = vpow2.f32 %v170_v62 }
 0x1bf   :  { %v382_v63 = vpop.eup %381 }
 0x1c0   :  { %342 = vmatmul.mubr.f32.vlgmr.msra.gmra.mrb[0].mxu1 %v382_v63 }
 0x293   :  { %v254_v0 = vpop.f32.mrb[0].mxu1 }
 0x294   :  { %383 = vrcp.f32 %v254_v0  ;;  %v343_v1 = vpop.f32.mrb[1].mxu1 }
 0x29e   :  { %v384_v2 = vpop.eup %383 }
 0x29f   :  { %v259_v3 = vmul.f32 %v384_v2, %v382_v63 }
 0x2a1   :  { %260 = vst [vmem:[#allocation8] sm:$0xff] %v259_v3 }
 0x2a2   :  { %462 = shalt.err (!%p459_p0)
}
 0x2a3   :  { %s463_s12 = scalar_lea.hbm %s586_s5, 128 }
 0x2a4   :  { %p464_p1 = scmp.ne.s32.totalorder %s586_s5, %s463_s12  ;;  %p467_p2 = scmp.lt.u32.totalorder %s463_s12, %s586_s5 }
 0x2a6   :  { %p469_p3 = pnand %p467_p2, %p464_p1 }
 0x2a8   :  { %472 = shalt.err (!%p469_p3)
}
 0x2a9   :  { %270 = dma.vmem_to_hbm [thread:$0]  %s268_s8, 128, %s586_s5, [#allocation4]  }
 0x2aa   :  { %477 = dma.done.wait [#allocation4], 128  }
 0x2ab   :  { %478 = vsyncadd [#allocation4], 4294967168 }
 0x2ac   :  { %274 = vsyncpa [#allocation3], 1 }
 0x2ad   :  { %275 = vsyncpa [#allocation6], 1 }
 0x2ae   :  { %276 = vsyncpa [#allocation4], 1 }

</bundles_post_ra>
